<compile_context>
chip_gen: v7x
topology: tpu7x:2x2x1
jax: 0.10.0
libtpu: 0.0.40
codegen_flags: <defaults>
</compile_context>

<pallas_src>
import functools

import jax
import jax.numpy as jnp
from jax import lax
from jax.experimental import pallas as pl
from jax.experimental.pallas import tpu as pltpu


def gbn_kernel(x_ref, gamma_ref, beta_ref, o_ref, *, chunks_per_block, vbs, eps):
    # x_ref / o_ref:        (chunks_per_block * vbs, Cp)  fused ghost-batch chunks
    # gamma_ref / beta_ref: (1, Cp)
    gamma = gamma_ref[...].astype(jnp.float32)
    beta = beta_ref[...].astype(jnp.float32)
    inv_vbs = jnp.float32(1.0 / vbs)
    eps_f = jnp.float32(eps)

    def body(gi, carry):
        # Process one virtual batch at a time: bounds the f32 working set to
        # (vbs, Cp) regardless of how many chunks are fused into the DMA block.
        start = pl.multiple_of(gi * vbs, vbs)
        xc = x_ref[pl.ds(start, vbs), :].astype(jnp.float32)
        mean = jnp.sum(xc, axis=0, keepdims=True) * inv_vbs        # (1, Cp)
        xm = xc - mean
        # Centered second moment: avoids E[x^2]-mean^2 cancellation and can
        # never go negative, so rsqrt stays well-defined.
        var = jnp.sum(xm * xm, axis=0, keepdims=True) * inv_vbs    # (1, Cp)
        scale = gamma * lax.rsqrt(var + eps_f)                     # EUP rsqrt
        o_ref[pl.ds(start, vbs), :] = (xm * scale + beta).astype(o_ref.dtype)
        return carry

    lax.fori_loop(0, chunks_per_block, body, 0, unroll=True)


def _block_byte_budget():
    """Per-generation byte budget for the x block (in+out double-buffering
    means ~4x this amount lives in VMEM)."""
    try:
        kind = jax.devices()[0].device_kind.lower()
    except Exception:
        kind = ""
    if "v7" in kind:
        return 4 << 20          # v7x: 64 MiB physical VMEM per TensorCore
    if "v5 lite" in kind or "v5e" in kind:
        return 3 << 20          # v5e: lower HBM BW, small default scoped VMEM
    return 8 << 20              # v4 / v6e: 128 MiB VMEM


def _pick_chunks_per_block(num_chunks, vbs, c_padded, itemsize, byte_budget,
                           min_grid_steps):
    """Number of ghost-batch chunks fused per grid step (byte-budgeted)."""
    bytes_per_chunk = vbs * c_padded * itemsize
    g_budget = max(1, byte_budget // bytes_per_chunk)
    # Keep >= min_grid_steps grid steps whenever possible so each TensorCore
    # gets several iterations for prefetch/writeback overlap.
    g_steps = max(1, num_chunks // min_grid_steps)
    return int(max(1, min(g_budget, g_steps, num_chunks)))


def gbn(x, gamma, beta, *, vbs, eps=1e-5, block_byte_budget=None,
        min_grid_steps=8):
    """Ghost Batch Norm forward.

    x:           (B, input_dim)
    gamma, beta: (input_dim,)   BatchNorm1d affine params
    vbs:         virtual batch size
    """
    B, C = x.shape
    # TODO(synk): ragged last chunk from torch.chunk (B % vbs != 0) not reproduced.
    assert B % vbs == 0, "this kernel assumes batch divisible by vbs"

    itemsize = jnp.dtype(x.dtype).itemsize
    sublane = {1: 32, 2: 16, 4: 8}.get(itemsize, 8)
    assert vbs % sublane == 0, (
        f"vbs must be a multiple of {sublane} for dtype {x.dtype}")

    num_chunks = B // vbs
    Cp = ((C + 127) // 128) * 128          # lane-pad channels -> unmasked stores

    if block_byte_budget is None:
        block_byte_budget = _block_byte_budget()
    g = _pick_chunks_per_block(num_chunks, vbs, Cp, itemsize,
                               block_byte_budget, min_grid_steps)
    rows_per_block = g * vbs
    grid_steps = pl.cdiv(num_chunks, g)
    B_pad = grid_steps * rows_per_block    # pad to whole blocks (whole vbs chunks)

    if B_pad != B or Cp != C:
        x_p = jnp.pad(x, ((0, B_pad - B), (0, Cp - C)))
    else:
        x_p = x
    gamma_p = (gamma if Cp == C else jnp.pad(gamma, (0, Cp - C))).reshape(1, Cp)
    beta_p = (beta if Cp == C else jnp.pad(beta, (0, Cp - C))).reshape(1, Cp)

    kernel = functools.partial(gbn_kernel, chunks_per_block=g, vbs=vbs, eps=eps)

    # Explicit VMEM budget: double-buffered in + out blocks, per-chunk f32
    # temporaries, gamma/beta, plus headroom.  Safe on v7x's 64 MiB.
    block_bytes = rows_per_block * Cp * itemsize
    f32_chunk = vbs * Cp * 4
    vmem_limit = int(min(max(4 * block_bytes + 8 * f32_chunk + (2 << 20),
                             8 << 20),
                         48 << 20))

    cost = pl.CostEstimate(
        flops=7 * B_pad * Cp,                    # mean, center, sq, sum, scale, FMA
        transcendentals=grid_steps * g * Cp,     # rsqrt per chunk per channel
        bytes_accessed=2 * B_pad * Cp * itemsize + 2 * Cp * 4,
    )

    out = pl.pallas_call(
        kernel,
        out_shape=jax.ShapeDtypeStruct((B_pad, Cp), x.dtype),
        grid_spec=pltpu.PrefetchScalarGridSpec(
            num_scalar_prefetch=0,
            grid=(grid_steps,),
            in_specs=[
                pl.BlockSpec((rows_per_block, Cp), lambda i: (i, 0)),  # x tile
                pl.BlockSpec((1, Cp), lambda i: (0, 0)),               # gamma
                pl.BlockSpec((1, Cp), lambda i: (0, 0)),               # beta
            ],
            out_specs=pl.BlockSpec((rows_per_block, Cp), lambda i: (i, 0)),
        ),
        compiler_params=pltpu.CompilerParams(
            dimension_semantics=("parallel",),
            vmem_limit_bytes=vmem_limit,
        ),
        cost_estimate=cost,
    )(x_p, gamma_p, beta_p)

    if B_pad != B or Cp != C:
        out = out[:B, :C]
    return out


def gbn_ref(x, gamma, beta, *, vbs, eps=1e-5):
    """Pure-JAX reference matching the PyTorch GBN training-mode forward."""
    B = x.shape[0]
    outs = []
    for s in range(0, B, vbs):
        c = x[s:s + vbs].astype(jnp.float32)
        mean = jnp.mean(c, axis=0, keepdims=True)
        var = jnp.mean((c - mean) ** 2, axis=0, keepdims=True)  # biased
        y = (c - mean) / jnp.sqrt(var + eps) * gamma + beta
        outs.append(y)
    return jnp.concatenate(outs, axis=0).astype(x.dtype)


if __name__ == "__main__":
    key = jax.random.PRNGKey(0)
    k1, k2, k3, k4, k5, k6 = jax.random.split(key, 6)

    # Case 1: lane-dense channel dim (128), 4 ghost batches of 64.
    batch, input_dim, vbs = 256, 128, 64
    x = jax.random.normal(k1, (batch, input_dim), dtype=jnp.float32) * 2.0 + 0.5
    gamma = 1.0 + 0.1 * jax.random.normal(k2, (input_dim,), dtype=jnp.float32)
    beta = 0.1 * jax.random.normal(k3, (input_dim,), dtype=jnp.float32)

    out = jax.block_until_ready(gbn(x, gamma, beta, vbs=vbs))
    ref = gbn_ref(x, gamma, beta, vbs=vbs)
    assert out.shape == (batch, input_dim)
    assert jnp.allclose(out, ref, atol=1e-5, rtol=1e-5), "case 1 mismatch"

    # Case 2: non-128-aligned channels (lane-padded) and a chunk count (5) that
    # does not divide the fusion factor evenly (exercises cdiv + row padding).
    batch2, input_dim2, vbs2 = 160, 48, 32
    x2 = jax.random.normal(k4, (batch2, input_dim2), dtype=jnp.float32) * 3.0 - 1.0
    gamma2 = 1.0 + 0.1 * jax.random.normal(k5, (input_dim2,), dtype=jnp.float32)
    beta2 = 0.1 * jax.random.normal(k6, (input_dim2,), dtype=jnp.float32)

    out2 = jax.block_until_ready(gbn(x2, gamma2, beta2, vbs=vbs2, min_grid_steps=2))
    ref2 = gbn_ref(x2, gamma2, beta2, vbs=vbs2)
    assert out2.shape == (batch2, input_dim2)
    assert jnp.allclose(out2, ref2, atol=1e-5, rtol=1e-5), "case 2 mismatch"

    print("KERNEL_OK")
</pallas_src>

<mosaic_0001>
module attributes {stable_mosaic.version = 11 : i64} {
  func.func @gbn_kernel(%arg0: i32, %arg1: memref<64x128xf32, #tpu.memory_space<vmem>>, %arg2: memref<1x128xf32, #tpu.memory_space<vmem>>, %arg3: memref<1x128xf32, #tpu.memory_space<vmem>>, %arg4: memref<64x128xf32, #tpu.memory_space<vmem>>) attributes {dimension_semantics = [#tpu.dimension_semantics<parallel>], iteration_bounds = array<i64: 4>, scalar_prefetch = 0 : i64, scratch_operands = 0 : i64, tpu.core_type = #tpu.core_type<tc>, window_params = [{transform_indices = @transform_0, window_bounds = array<i64: 64, 128>}, {pipeline_mode = #tpu.pipeline_mode<synchronous>, transform_indices = @transform_1, window_bounds = array<i64: 1, 128>}, {pipeline_mode = #tpu.pipeline_mode<synchronous>, transform_indices = @transform_2, window_bounds = array<i64: 1, 128>}, {transform_indices = @transform_3, window_bounds = array<i64: 64, 128>}]} {
    %c0 = arith.constant 0 : index
    %c0_0 = arith.constant 0 : index
    %0 = vector.load %arg2[%c0, %c0_0] : memref<1x128xf32, #tpu.memory_space<vmem>>, vector<1x128xf32>
    %c0_1 = arith.constant 0 : index
    %c0_2 = arith.constant 0 : index
    %1 = vector.load %arg3[%c0_1, %c0_2] : memref<1x128xf32, #tpu.memory_space<vmem>>, vector<1x128xf32>
    %cst = arith.constant 1.562500e-02 : f32
    %cst_3 = arith.constant 9.99999974E-6 : f32
    %c0_i32 = arith.constant 0 : i32
    %c64_i32 = arith.constant 64 : i32
    %2 = arith.muli %c0_i32, %c64_i32 : i32
    %3 = tpu.assume_multiple %2, 64 : i32
    %4 = arith.index_cast %3 : i32 to index
    %c0_4 = arith.constant 0 : index
    %5 = vector.load %arg1[%4, %c0_4] : memref<64x128xf32, #tpu.memory_space<vmem>>, vector<64x128xf32>
    %cst_5 = arith.constant dense<0.000000e+00> : vector<128xf32>
    %6 = vector.multi_reduction <add>, %5, %cst_5 [0] : vector<64x128xf32> to vector<128xf32>
    %7 = vector.shape_cast %6 : vector<128xf32> to vector<1x128xf32>
    %8 = vector.broadcast %cst : f32 to vector<1x128xf32>
    %9 = arith.mulf %7, %8 : vector<1x128xf32>
    %10 = vector.broadcast %9 : vector<1x128xf32> to vector<64x128xf32>
    %11 = arith.subf %5, %10 : vector<64x128xf32>
    %12 = arith.mulf %11, %11 : vector<64x128xf32>
    %cst_6 = arith.constant dense<0.000000e+00> : vector<128xf32>
    %13 = vector.multi_reduction <add>, %12, %cst_6 [0] : vector<64x128xf32> to vector<128xf32>
    %14 = vector.shape_cast %13 : vector<128xf32> to vector<1x128xf32>
    %15 = vector.broadcast %cst : f32 to vector<1x128xf32>
    %16 = arith.mulf %14, %15 : vector<1x128xf32>
    %17 = vector.broadcast %cst_3 : f32 to vector<1x128xf32>
    %18 = arith.addf %16, %17 : vector<1x128xf32>
    %19 = math.rsqrt %18 : vector<1x128xf32>
    %20 = arith.mulf %0, %19 : vector<1x128xf32>
    %21 = vector.broadcast %20 : vector<1x128xf32> to vector<64x128xf32>
    %22 = arith.mulf %11, %21 : vector<64x128xf32>
    %23 = vector.broadcast %1 : vector<1x128xf32> to vector<64x128xf32>
    %24 = arith.addf %22, %23 : vector<64x128xf32>
    %25 = arith.index_cast %3 : i32 to index
    %c0_7 = arith.constant 0 : index
    %26 = vector.load %arg4[%25, %c0_7] : memref<64x128xf32, #tpu.memory_space<vmem>>, vector<64x128xf32>
    tpu.vector_store %arg4[%25, %c0_7], %24 {strides = array<i32>} : memref<64x128xf32, #tpu.memory_space<vmem>>, vector<64x128xf32>,
    %c1_i32 = arith.constant 1 : i32
    return
  }
  func.func @transform_0(%arg0: i32) -> (i32, i32) {
    %c0_i32 = arith.constant 0 : i32
    %c0_i32_0 = arith.constant 0 : i32
    return %arg0, %c0_i32 : i32, i32
  }
  func.func @transform_1(%arg0: i32) -> (i32, i32) {
    %c0_i32 = arith.constant 0 : i32
    %c0_i32_0 = arith.constant 0 : i32
    %c0_i32_1 = arith.constant 0 : i32
    return %c0_i32, %c0_i32_0 : i32, i32
  }
  func.func @transform_2(%arg0: i32) -> (i32, i32) {
    %c0_i32 = arith.constant 0 : i32
    %c0_i32_0 = arith.constant 0 : i32
    %c0_i32_1 = arith.constant 0 : i32
    return %c0_i32, %c0_i32_0 : i32, i32
  }
  func.func @transform_3(%arg0: i32) -> (i32, i32) {
    %c0_i32 = arith.constant 0 : i32
    %c0_i32_0 = arith.constant 0 : i32
    return %arg0, %c0_i32 : i32, i32
  }
}

</mosaic_0001>

<bundles_post_ra>
// kernel: tpu_custom_call.1
= control target key start
LH: loop header
LB: loop body
LE: loop exit
PB: predicated region body
PF: predicated region fallthrough
CT: control target
= control target key end

     0   :  { %8 = vsyncpa [#allocation3], 0  ;;  %s734_s0 = inlined_call_operand.hbm [shape: f32[256,128], index: 0, kind: input, shape index: {}]   ;;  %s735_s1 = inlined_call_operand.vmem [shape: f32[1,128], index: 1, kind: input, shape index: {}]   ;;  %s736_s2 = inlined_call_operand.vmem [shape: f32[1,128], index: 2, kind: input, shape index: {}]   ;;  %s737_s3 = inlined_call_operand.hbm [shape: f32[256,128], index: 3, kind: output, shape index: {}]  }
   0x1   :  { %10 = vsyncpa [#allocation3 + $0x1], 0 }
   0x2   :  { %11 = vsyncpa [#allocation4], 0 }
   0x3   :  { %13 = vsyncpa [#allocation4 + $0x1], 0  ;;  %s564_s12 = smov 0   ;;  %s566_s13 = smov 0  }
   0x4   :  { %s568_s14 = smov 0   ;;  %s570_s15 = smov 0  }
   0x5 LB: > { %s585_s16 = sadd.s32 4294967295, %s536_s15   ;;  %s371_s17 = sadd.s32 4294967294, %s536_s15   ;;  %s536_s15 = sphi %s570_s15, %s749_s15   ;;  %s532_s14 = sphi %s568_s14, %s748_s14   ;;  %s528_s13 = sphi %s566_s13, %s747_s13   ;;  %s524_s12 = sphi %s564_s12, %s746_s12  }
   0x6   : > { %s589_s18 = sadd.s32 1, %s536_s15   ;;  %s26_s19 = sadd.s32 1, %s532_s14 }
   0x7   : > { %s23_s20 = ssub.s32 %s536_s15, %s589_s18  ;;  %p33_p0 = scmp.ne.s32.totalorder %s532_s14, %s528_s13 }
   0x8   : > { %p24_p1 = scmp.eq.s32.totalorder %s23_s20, 0  ;;  %p34_p2 = scmp.eq.s32.totalorder %s536_s15, 0 }
   0x9   : > { %p39_p3 = scmp.ne.s32.totalorder %s528_s13, %s524_s12  ;;  %p40_p4 = scmp.eq.s32.totalorder %s585_s16, 0 }
   0xa   : > { %s601_s21 = scalar_select %p24_p1, %s532_s14, %s26_s19  }
   0xb   : > { %p603_p5 = por %p34_p2, %p33_p0  ;;  %p607_p6 = por %p40_p4, %p39_p3 }
   0xc   : > { %p105_p7 = scmp.eq.s32.totalorder %s585_s16, 3  ;;  %p111_p8 = scmp.eq.s32.totalorder %s371_s17, 3 }
   0xd   : > { %p400_p9 = scmp.lt.s32.totalorder %s536_s15, 4  ;;  %s137_s26 = sand.u32 1, %s532_s14  }
   0xe   : > { %p613_p10 = por %p105_p7, %p33_p0  ;;  %p617_p11 = por %p111_p8, %p39_p3 }
   0xf   : > { %s386_s27 = sshll.u32 %s536_s15, 10  ;;  %s374_s28 = sshll.u32 %s137_s26, 6 }
  0x10   : > { %s741_s24 = scalar_select %p613_p10, 1, 0 }
  0x11   : > { %s742_s25 = scalar_select %p617_p11, 1, 0 }
  0x12   : > { %s626_s4 = scalar_lea.hbm %s734_s0, %s386_s27  ;;  %s141_s5 = scalar_lea.vmem [#allocation2], %s374_s28 }
  0x13   : > { %s148_s6 = sshll.u32 %s141_s5, 4  ;;  %p630_p12 = pnand %p400_p9, %p603_p5  ;;  %s634_s6 = int_to_ptr.vmem [resolvable:$true] %s148_s6 }
  0x14   : > { %s636_s8 = scalar_lea.sflag [#allocation3], %s137_s26  ;;  %s440_s9 = scalar_lea.hbm %s626_s4, 1024 }
  0x15   : > { %p441_p13 = scmp.ne.s32.totalorder %s626_s4, %s440_s9  ;;  %p442_p0 = pneg %p630_p12 }
  0x16   : > { %s445_s17 = scalar_lea.hbm %s734_s0, 4096  ;;  %p446_p3 = scmp.lt.u32.totalorder %s626_s4, %s734_s0 }
  0x17   : > { %p443_p1 = pnand %p442_p0, %p441_p13  ;;  %p447_p4 = scmp.lt.u32.totalorder %s445_s17, %s440_s9 }
  0x18   : > { %p449_p7 = scmp.lt.u32.totalorder %s440_s9, %s626_s4 }
  0x19   : > { %p444_p2 = pneg %p443_p1  ;;  %p448_p5 = por %p447_p4, %p446_p3 }
  0x1b   : > { %p450_p8 = por %p449_p7, %p448_p5 }
  0x1d   : > { %p451_p9 = pnand %p450_p8, %p444_p2 }
  0x1f   : > { %454 = shalt.err (!%p451_p9)
}
  0x20   : > { %s455_s22 = scalar_lea.vmem %s634_s6, 1024  ;;  %s538_s26 = smov [#allocation2]  }
  0x21   : > { %p456_p13 = scmp.ne.s32.totalorder %s634_s6, %s455_s22  ;;  %s460_s27 = sshll.u32 %s538_s26, 4  ;;  %s461_s27 = int_to_ptr.vmem [resolvable:$false] %s460_s27 }
  0x22   : > { %s462_s28 = scalar_lea.vmem %s461_s27, 2048  ;;  %p463_p10 = scmp.lt.s32.totalorder %s634_s6, %s461_s27 }
  0x23   : > { %p458_p1 = pnand %p456_p13, %p442_p0  ;;  %p464_p3 = scmp.lt.s32.totalorder %s462_s28, %s455_s22 }
  0x25   : > { %p459_p11 = pneg %p458_p1  ;;  %p465_p4 = por %p464_p3, %p463_p10 }
  0x27   : > { %p466_p5 = pnand %p465_p4, %p459_p11 }
  0x29   : > { %469 = shalt.err (!%p466_p5)
}
  0x2a   : > { %s539_s29 = smov 128   ;;  %s540_s30 = smov 8  }
  0x2b   : > { %395 = dma.hbm_to_vmem [thread:$0]  (!%p630_p12), %s626_s4, 1024, %s634_s6, %s636_s8, %s539_s29, %s539_s29, %s540_s30  }
  0x2c   : > { %p377_p0 = scmp.ge.s32.totalorder %s536_s15, 1  ;;  %p156_p2 = scmp.lt.s32.totalorder %s536_s15, 5 }
  0x2e   : > { %p157_p7 = pnand %p377_p0, %p156_p2 }
  0x2f   : > { %s667_s5 = sand.u32 (!%p157_p7), 1, %s528_s13  }
  0x30   : > { %160 = sbr.rel (%p157_p7) target bundleno = 156 (0x9c), region = 32  ;;  %s378_s9 = sshll.u32 (!%p157_p7), %s667_s5, 6 }
  0x31   : > { %s163_s10 = scalar_lea.sflag (!%p157_p7), [#allocation3], %s667_s5  ;;  %s166_s11 = scalar_lea.vmem (!%p157_p7), [#allocation2], %s378_s9 }
  0x37   : > { %515 = dma.done.wait (%p607_p6), %s163_s10, 1024  }
  0x38   : > { %517 = vsyncadd (%p607_p6), %s163_s10, 4294966272  ;;  %v193_v0 = vld [vmem:[%s166_s11] sm:$0xff]  ;;  %v194_v1 = vld [vmem:[%s166_s11 + $0x8] sm:$0xff]  ;;  %v249_v53 = vlaneseq  ;;  %s188_s8 = scalar_lea.vmem [#allocation5], %s378_s9  ;;  %s387_s19 = sshll.u32 %s585_s16, 10 }
  0x39   : > { %v195_v2 = vld [vmem:[%s166_s11 + $0x10] sm:$0xff]  ;;  %v201_v3 = vadd.f32 %v194_v1, %v193_v0  ;;  %v196_v4 = vld [vmem:[%s166_s11 + $0x18] sm:$0xff]  ;;  %v197_v6 = vld [vmem:[%s166_s11 + $0x20] sm:$0xff]  ;;  %s298_s17 = sshll.u32 %s188_s8, 4  ;;  %s691_s16 = scalar_lea.hbm %s737_s3, %s387_s19  ;;  %s686_s17 = int_to_ptr.vmem [resolvable:$true] %s298_s17 }
  0x3a   : > { %v198_v8 = vld [vmem:[%s166_s11 + $0x28] sm:$0xff]  ;;  %v199_v10 = vld [vmem:[%s166_s11 + $0x30] sm:$0xff]  ;;  %v200_v12 = vld [vmem:[%s166_s11 + $0x38] sm:$0xff]  ;;  %v250_v54 = vshrl.u32 %v249_v53, 7  ;;  %s285_s26 = scalar_lea.sflag [#allocation4], %s667_s5  ;;  %s470_s27 = scalar_lea.vmem %s686_s17, 1024 }
  0x3b   : > { %v202_v5 = vadd.f32 %v201_v3, %v195_v2  ;;  %v191_v55 = vld [vmem:[%s735_s1] sm:$0x1]  ;;  %p471_p6 = scmp.ne.s32.totalorder %s686_s17, %s470_s27  ;;  %p744_p10 = scmp.ne.s32.totalorder %s741_s24, 0 }
  0x3c   : > { %v251_v56 = vsub.s32 0, %v250_v54  ;;  %v380_v60 = vld [vmem:[%s736_s2] ss:$0 sm:$0xff]  ;;  %s541_s28 = smov [#allocation5]  }
  0x3d   : > { %v203_v7 = vadd.f32 %v202_v5, %v196_v4  ;;  %p472_p11 = pnand %p471_p6, %p744_p10  ;;  %s474_s29 = sshll.u32 %s541_s28, 4  ;;  %s475_s29 = int_to_ptr.vmem [resolvable:$false] %s474_s29 }
  0x3e   : > { %s476_s30 = scalar_lea.vmem %s475_s29, 2048  ;;  %p477_p8 = scmp.lt.s32.totalorder %s686_s17, %s475_s29 }
  0x3f   : > { %v204_v9 = vadd.f32 %v203_v7, %v197_v6  ;;  %p473_p12 = pneg %p472_p11  ;;  %p478_p9 = scmp.lt.s32.totalorder %s476_s30, %s470_s27 }
  0x41   : > { %v205_v11 = vadd.f32 %v204_v9, %v198_v8  ;;  %p479_p13 = por %p478_p9, %p477_p8 }
  0x43   : > { %v206_v13 = vadd.f32 %v205_v11, %v199_v10  ;;  %p480_p1 = pnand %p479_p13, %p473_p12 }
  0x45   : > { %v207_v14 = vadd.f32 %v206_v13, %v200_v12 }
  0x47   : > { %v208_v15 = vrot.slane %v207_v14, 4 }
  0x49   : > { %v209_v16 = vadd.f32 %v208_v15, %v207_v14 }
  0x4b   : > { %v210_v17 = vrot.slane %v209_v16, 2 }
  0x4d   : > { %v211_v18 = vadd.f32 %v210_v17, %v209_v16 }
  0x4f   : > { %v212_v19 = vrot.slane %v211_v18, 1 }
  0x51   : > { %v213_v20 = vadd.f32 %v212_v19, %v211_v18 }
  0x53   : > { %v214_v21 = vmul.f32 0.015625, %v213_v20 }
  0x55   : > { %v215_v22 = vsub.f32 %v193_v0, %v214_v21  ;;  %v216_v23 = vsub.f32 %v194_v1, %v214_v21  ;;  %v217_v24 = vsub.f32 %v195_v2, %v214_v21  ;;  %v218_v25 = vsub.f32 %v196_v4, %v214_v21 }
  0x56   : > { %v219_v26 = vsub.f32 %v197_v6, %v214_v21  ;;  %v220_v30 = vsub.f32 %v198_v8, %v214_v21  ;;  %v221_v33 = vsub.f32 %v199_v10, %v214_v21  ;;  %v222_v36 = vsub.f32 %v200_v12, %v214_v21 }
  0x57   : > { %v223_v27 = vmul.f32 %v215_v22, %v215_v22  ;;  %v224_v28 = vmul.f32 %v216_v23, %v216_v23  ;;  %v225_v29 = vmul.f32 %v217_v24, %v217_v24  ;;  %v226_v31 = vmul.f32 %v218_v25, %v218_v25 }
  0x58   : > { %v227_v34 = vmul.f32 %v219_v26, %v219_v26  ;;  %v228_v37 = vmul.f32 %v220_v30, %v220_v30  ;;  %v229_v39 = vmul.f32 %v221_v33, %v221_v33  ;;  %v230_v41 = vmul.f32 %v222_v36, %v222_v36 }
  0x59   : > { %v231_v32 = vadd.f32 %v224_v28, %v223_v27 }
  0x5b   : > { %v232_v35 = vadd.f32 %v231_v32, %v225_v29 }
  0x5d   : > { %v233_v38 = vadd.f32 %v232_v35, %v226_v31 }
  0x5f   : > { %v234_v40 = vadd.f32 %v233_v38, %v227_v34 }
  0x61   : > { %v235_v42 = vadd.f32 %v234_v40, %v228_v37 }
  0x63   : > { %v236_v43 = vadd.f32 %v235_v42, %v229_v39 }
  0x65   : > { %v237_v44 = vadd.f32 %v236_v43, %v230_v41 }
  0x67   : > { %v238_v45 = vrot.slane %v237_v44, 4 }
  0x69   : > { %v239_v46 = vadd.f32 %v238_v45, %v237_v44 }
  0x6b   : > { %v240_v47 = vrot.slane %v239_v46, 2 }
  0x6d   : > { %v241_v48 = vadd.f32 %v240_v47, %v239_v46 }
  0x6f   : > { %v242_v49 = vrot.slane %v241_v48, 1 }
  0x71   : > { %v243_v50 = vadd.f32 %v242_v49, %v241_v48 }
  0x73   : > { %v244_v51 = vmul.f32 0.015625, %v243_v50 }
  0x75   : > { %v245_v52 = vadd.f32 1e-05, %v244_v51 }
  0x77   : > { %438 = vrsqrt.f32 %v245_v52 }
  0x81   : > { %v439_v57 = vpop.eup %438 }
  0x82   : > { %v247_v58 = vmul.f32 %v439_v57, %v191_v55 }
  0x84   : > { %v252_v59 = vrot.slane %v247_v58, %v251_v56 }
  0x86   : > { %v254_v61 = vmul.f32 %v252_v59, %v215_v22  ;;  %v255_v62 = vmul.f32 %v252_v59, %v216_v23  ;;  %v256_v63 = vmul.f32 %v252_v59, %v217_v24  ;;  %v257_v0 = vmul.f32 %v252_v59, %v218_v25 }
  0x87   : > { %v258_v1 = vmul.f32 %v252_v59, %v219_v26  ;;  %v259_v2 = vmul.f32 %v252_v59, %v220_v30  ;;  %v260_v3 = vmul.f32 %v252_v59, %v221_v33  ;;  %v261_v4 = vmul.f32 %v252_v59, %v222_v36 }
  0x88   : > { %v268_v5 = vadd.f32 %v380_v60, %v254_v61  ;;  %v269_v6 = vadd.f32 %v380_v60, %v255_v62  ;;  %v270_v7 = vadd.f32 %v380_v60, %v256_v63  ;;  %v271_v8 = vadd.f32 %v380_v60, %v257_v0 }
  0x89   : > { %v272_v9 = vadd.f32 %v380_v60, %v258_v1  ;;  %v273_v10 = vadd.f32 %v380_v60, %v259_v2  ;;  %v274_v11 = vadd.f32 %v380_v60, %v260_v3  ;;  %v275_v12 = vadd.f32 %v380_v60, %v261_v4 }
  0x8a   : > { %276 = vst [vmem:[%s188_s8] sm:$0xff] %v268_v5  ;;  %277 = vst [vmem:[%s188_s8 + $0x8] sm:$0xff] %v269_v6 }
  0x8b   : > { %278 = vst [vmem:[%s188_s8 + $0x10] sm:$0xff] %v270_v7  ;;  %279 = vst [vmem:[%s188_s8 + $0x18] sm:$0xff] %v271_v8 }
  0x8c   : > { %280 = vst [vmem:[%s188_s8 + $0x20] sm:$0xff] %v272_v9  ;;  %281 = vst [vmem:[%s188_s8 + $0x28] sm:$0xff] %v273_v10 }
  0x8d   : > { %282 = vst [vmem:[%s188_s8 + $0x30] sm:$0xff] %v274_v11  ;;  %283 = vst [vmem:[%s188_s8 + $0x38] sm:$0xff] %v275_v12 }
  0x8e   : > { %483 = shalt.err (!%p480_p1)
}
  0x8f   : > { %s484_s9 = scalar_lea.hbm %s691_s16, 1024  ;;  %s488_s23 = scalar_lea.hbm %s737_s3, 4096 }
  0x90   : > { %p485_p3 = scmp.ne.s32.totalorder %s691_s16, %s484_s9  ;;  %p489_p0 = scmp.lt.u32.totalorder %s691_s16, %s737_s3 }
  0x91   : > { %p490_p2 = scmp.lt.u32.totalorder %s488_s23, %s484_s9  ;;  %p492_p6 = scmp.lt.u32.totalorder %s484_s9, %s691_s16 }
  0x92   : > { %p486_p4 = pnand %p485_p3, %p744_p10 }
  0x93   : > { %p491_p7 = por %p490_p2, %p489_p0 }
  0x94   : > { %p487_p5 = pneg %p486_p4 }
  0x95   : > { %p493_p11 = por %p492_p6, %p491_p7 }
  0x97   : > { %p494_p12 = pnand %p493_p11, %p487_p5 }
  0x99   : > { %497 = shalt.err (!%p494_p12)
}
  0x9a   : > { %s542_s7 = smov 128   ;;  %s543_s8 = smov 8  }
  0x9b   : > { %390 = dma.vmem_to_hbm [thread:$0]  (%p744_p10), %s686_s17, 1024, %s691_s16, %s285_s26, %s542_s7, %s542_s7, %s543_s8  }
  0x9c PF: > { %p401_p8 = scmp.ge.s32.totalorder %s536_s15, 2  ;;  %s313_s19 = sand.u32 1, %s524_s12  }
  0x9d   : > { %p745_p9 = scmp.ne.s32.totalorder %s742_s25, 0  ;;  %s314_s20 = scalar_lea.sflag [#allocation4], %s313_s19 }
  0x9f   : > { %p397_p13 = pnand %p401_p8, %p745_p9 }
  0xa1   : > { %519 = dma.done.wait (!%p397_p13), %s314_s20, 1024  }
  0xa2   : > { %521 = vsyncadd (!%p397_p13), %s314_s20, 4294966272  ;;  %p16_p1 = scmp.ge.s32.totalorder %s589_s18, 6   ;;  %s746_s12 = smov %s528_s13 }
  0xa3   : > { %s747_s13 = smov %s532_s14  ;;  %s748_s14 = smov %s601_s21 }
  0xa4   : > { %s749_s15 = smov %s589_s18  ;;  %18 = sbr.rel (!%p16_p1) target bundleno = 5 (0x5), region = 77 }
  0xab   :  { %319 = vsyncpa [#allocation3], 1 }
  0xac   :  { %321 = vsyncpa [#allocation3 + $0x1], 1 }
  0xad   :  { %322 = vsyncpa [#allocation4], 1 }
  0xae   :  { %324 = vsyncpa [#allocation4 + $0x1], 1 }

</bundles_post_ra>
